<compile_context>
chip_gen: v7x
topology: tpu7x:2x2x1
jax: 0.10.0
libtpu: 0.0.40
codegen_flags: <defaults>
</compile_context>

<pallas_src>
from math import comb

import numpy as np
import jax
import jax.numpy as jnp
from jax.experimental import pallas as pl
from jax.experimental.pallas import tpu as pltpu


def get_dicke_basis_4q():
    """Deterministic reconstruction of numqi.dicke.get_dicke_basis(4, dim=2).

    Row k is the symmetric Dicke state with k excitations on 4 qubits: a length-16
    vector with 1/sqrt(C(4,k)) on every bitstring of Hamming weight k.  The module
    reverses row order with [::-1]; that is done by the caller.
    """
    basis = np.zeros((5, 16), dtype=np.float64)
    for idx in range(16):
        k = bin(idx).count("1")
        basis[k, idx] = 1.0 / np.sqrt(comb(4, k))
    return basis


def _tree_add(parts):
    """Pairwise-tree sum of a list of arrays (keeps ILP, skips Nones)."""
    parts = [p for p in parts if p is not None]
    while len(parts) > 1:
        nxt = []
        for a in range(0, len(parts) - 1, 2):
            nxt.append(parts[a] + parts[a + 1])
        if len(parts) % 2:
            nxt.append(parts[-1])
        parts = nxt
    return parts[0]


def make_dicke_loss(pcoeff, basis, *, blk_rows=8, lanes=128):
    """Precompute all loss coefficients once (f64 numpy) and return a jitted
    batched loss(qcoeff_batch) -> losses, qcoeff_batch shape (N, 5)."""
    pcoeff = np.asarray(pcoeff, np.float64)
    pcoeff_n = pcoeff / np.linalg.norm(pcoeff)
    basis = np.asarray(basis, np.float64)
    mats = basis.reshape(5, 4, 4)

    pstate = (pcoeff_n[0] * basis[0] + pcoeff_n[1] * basis[2]
              + pcoeff_n[2] * basis[4]).reshape(4, 4)
    prdm = pstate @ pstate.T
    c0 = float(np.sum(prdm * prdm))                      # ||prdm||^2

    pairs = [(k, l) for k in range(5) for l in range(k, 5)]   # 15 symmetric pairs
    g_rows = []
    for (k, l) in pairs:
        g = mats[k] @ mats[l].T
        if l != k:
            g = g + mats[l] @ mats[k].T                   # symmetrized cross term
        g_rows.append(g.reshape(-1))
    g_rows = np.stack(g_rows)                             # (15, 16)

    a_vec = g_rows @ prdm.reshape(-1)                     # A_i = <prdm, G_i>
    c_mat = g_rows @ g_rows.T                             # C_ij = <G_i, G_j>

    tol = 1e-12
    a_terms = [(i, float(a_vec[i])) for i in range(15) if abs(a_vec[i]) > tol]
    c_terms = []
    for i in range(15):
        for j in range(i, 15):
            coef = c_mat[i, j] * (1.0 if i == j else 2.0)
            if abs(coef) > tol:
                c_terms.append((i, j, float(coef)))
    p0, p1, p2 = (float(pcoeff_n[0]), float(pcoeff_n[1]), float(pcoeff_n[2]))

    blk = blk_rows * lanes                                # candidates per grid step

    def kernel(q_ref, o_ref):
        # q_ref : VMEM (5, blk_rows, lanes)  raw qcoeff components, candidates on
        #                                    sublane x lane axes (fully dense vregs)
        # o_ref : VMEM (blk_rows, lanes)     per-candidate loss
        q = [q_ref[k] for k in range(5)]                  # each (blk_rows, lanes)
        sq = [qk * qk for qk in q]
        sumsq = (sq[0] + sq[1]) + (sq[2] + sq[3]) + sq[4]

        # 1/||q||^2 : approx reciprocal on the EUP + one Newton step (f32-accurate).
        r = pl.reciprocal(sumsq, approx=True)
        inv = r * (2.0 - sumsq * r)

        # Symmetric pair products w_i = q_k * q_l (diagonal reuses sq).
        w = [sq[k] if k == l else q[k] * q[l] for (k, l) in pairs]

        # Quadratic form  qAq = sum_i A_i w_i   (4 independent accumulators).
        qa = [None] * 4
        for n, (i, coef) in enumerate(a_terms):
            t = coef * w[i]
            s = n & 3
            qa[s] = t if qa[s] is None else qa[s] + t
        q_a_q = _tree_add(qa)

        # Quartic form  wCw = sum_{i<=j} c'_ij w_i w_j  (zero terms dropped above).
        wc = [None] * 4
        for n, (i, j, coef) in enumerate(c_terms):
            t = coef * (w[i] * w[j])
            s = n & 3
            wc[s] = t if wc[s] is None else wc[s] + t
        w_c_w = _tree_add(wc)

        # fidelity = (p . q_sel)^2 / ||q||^2  with raw q (normalization folded in).
        sel = p0 * q[0] + p1 * q[2] + p2 * q[4]

        o_ref[...] = c0 + inv * (sel * sel - 2.0 * q_a_q) + (inv * inv) * w_c_w

    @jax.jit
    def loss_batch(qcoeff_batch):
        """qcoeff_batch: (N, 5) -> losses (N,) float32."""
        qb = jnp.asarray(qcoeff_batch, jnp.float32)
        n = qb.shape[0]
        n_pad = (-n) % blk
        # pad with ones (module's default init) so padded lanes never divide by 0
        qp = jnp.pad(qb, ((0, n_pad), (0, 0)), constant_values=1.0)
        m = qp.shape[0]
        rows = m // lanes
        q3 = qp.T.reshape(5, rows, lanes)                 # layout plumbing only
        n_blocks = rows // blk_rows

        out = pl.pallas_call(
            kernel,
            out_shape=jax.ShapeDtypeStruct((rows, lanes), jnp.float32),
            grid=(n_blocks,),
            in_specs=[pl.BlockSpec((5, blk_rows, lanes), lambda i: (0, i, 0))],
            out_specs=pl.BlockSpec((blk_rows, lanes), lambda i: (i, 0)),
            compiler_params=pltpu.CompilerParams(
                dimension_semantics=("parallel",)),      # shards across v7x's 2 TCs
        )(q3)
        return out.reshape(m)[:n]

    return loss_batch


def ref_loss_numpy(q, pcoeff, basis):
    """Pure f64 numpy reference mirroring DummyModel.forward."""
    pcoeff = np.asarray(pcoeff, np.float64)
    p = pcoeff / np.linalg.norm(pcoeff)
    basis = np.asarray(basis, np.float64)
    pstate = (p[0] * basis[0] + p[1] * basis[2] + p[2] * basis[4]).reshape(4, 4)
    prdm = pstate @ pstate.T
    qn = np.asarray(q, np.float64) / np.linalg.norm(q)
    qstate = (qn @ basis).reshape(4, 4)
    tmp1 = (prdm - qstate @ qstate.T).reshape(-1)
    fid = (p[0] * qn[0] + p[1] * qn[2] + p[2] * qn[4]) ** 2
    return float(tmp1 @ tmp1 + fid)


if __name__ == "__main__":
    # --- deterministic setup (mirrors DummyModel.__init__) ---
    pcoeff_np = np.array([-0.91255, 0.32392, 0.24965])
    basis_np = get_dicke_basis_4q()[::-1].copy()          # (5,16), reversed as in module

    loss_fn = make_dicke_loss(pcoeff_np, basis_np)

    # Batch of candidate qcoeff vectors (amortizes dispatch; lane-dense layout).
    N = 2048
    qbatch = jax.random.normal(jax.random.PRNGKey(0), (N, 5), dtype=jnp.float32)
    # candidate 0: the module's default init (qcoeff = ones) -> exact forward() value
    qbatch = qbatch.at[0].set(jnp.ones(5, jnp.float32))
    # candidate 1: the qcoeff literal from the original script
    qbatch = qbatch.at[1].set(jnp.asarray(
        [-0.91795, -0.0322, 0.20626, -0.2866, -0.17789], jnp.float32))

    losses = jax.block_until_ready(loss_fn(qbatch))

    # f64 reference check over the whole batch
    q_np = np.asarray(qbatch, np.float64)
    ref = np.array([ref_loss_numpy(q_np[i], pcoeff_np, basis_np) for i in range(N)])
    err = float(np.max(np.abs(np.asarray(losses, np.float64) - ref)))
    assert err < 1e-3, ("max |pallas - f64 reference| too large", err)

    print("KERNEL_OK")
</pallas_src>

<mosaic_0001>
module attributes {stable_mosaic.version = 11 : i64} {
  func.func @kernel(%arg0: i32, %arg1: memref<5x8x128xf32, #tpu.memory_space<vmem>>, %arg2: memref<8x128xf32, #tpu.memory_space<vmem>>) attributes {dimension_semantics = [#tpu.dimension_semantics<parallel>], iteration_bounds = array<i64: 2>, scalar_prefetch = 0 : i64, scratch_operands = 0 : i64, tpu.core_type = #tpu.core_type<tc>, window_params = [{transform_indices = @transform_0, window_bounds = array<i64: 5, 8, 128>}, {transform_indices = @transform_1, window_bounds = array<i64: 8, 128>}]} {
    %c0 = arith.constant 0 : index
    %c0_0 = arith.constant 0 : index
    %c0_1 = arith.constant 0 : index
    %0 = vector.load %arg1[%c0, %c0_0, %c0_1] : memref<5x8x128xf32, #tpu.memory_space<vmem>>, vector<1x8x128xf32>
    %1 = vector.shape_cast %0 : vector<1x8x128xf32> to vector<8x128xf32>
    %c1 = arith.constant 1 : index
    %c0_2 = arith.constant 0 : index
    %c0_3 = arith.constant 0 : index
    %2 = vector.load %arg1[%c1, %c0_2, %c0_3] : memref<5x8x128xf32, #tpu.memory_space<vmem>>, vector<1x8x128xf32>
    %3 = vector.shape_cast %2 : vector<1x8x128xf32> to vector<8x128xf32>
    %c2 = arith.constant 2 : index
    %c0_4 = arith.constant 0 : index
    %c0_5 = arith.constant 0 : index
    %4 = vector.load %arg1[%c2, %c0_4, %c0_5] : memref<5x8x128xf32, #tpu.memory_space<vmem>>, vector<1x8x128xf32>
    %5 = vector.shape_cast %4 : vector<1x8x128xf32> to vector<8x128xf32>
    %c3 = arith.constant 3 : index
    %c0_6 = arith.constant 0 : index
    %c0_7 = arith.constant 0 : index
    %6 = vector.load %arg1[%c3, %c0_6, %c0_7] : memref<5x8x128xf32, #tpu.memory_space<vmem>>, vector<1x8x128xf32>
    %7 = vector.shape_cast %6 : vector<1x8x128xf32> to vector<8x128xf32>
    %c4 = arith.constant 4 : index
    %c0_8 = arith.constant 0 : index
    %c0_9 = arith.constant 0 : index
    %8 = vector.load %arg1[%c4, %c0_8, %c0_9] : memref<5x8x128xf32, #tpu.memory_space<vmem>>, vector<1x8x128xf32>
    %9 = vector.shape_cast %8 : vector<1x8x128xf32> to vector<8x128xf32>
    %10 = arith.mulf %1, %1 : vector<8x128xf32>
    %11 = arith.mulf %3, %3 : vector<8x128xf32>
    %12 = arith.mulf %5, %5 : vector<8x128xf32>
    %13 = arith.mulf %7, %7 : vector<8x128xf32>
    %14 = arith.mulf %9, %9 : vector<8x128xf32>
    %15 = arith.addf %10, %11 : vector<8x128xf32>
    %16 = arith.addf %12, %13 : vector<8x128xf32>
    %17 = arith.addf %15, %16 : vector<8x128xf32>
    %18 = arith.addf %17, %14 : vector<8x128xf32>
    %19 = tpu.reciprocal %18 {approx = true} : vector<8x128xf32> -> vector<8x128xf32>
    %20 = arith.mulf %18, %19 : vector<8x128xf32>
    %cst = arith.constant 2.000000e+00 : f32
    %21 = vector.broadcast %cst : f32 to vector<8x128xf32>
    %22 = arith.subf %21, %20 : vector<8x128xf32>
    %23 = arith.mulf %19, %22 : vector<8x128xf32>
    %24 = arith.mulf %1, %3 : vector<8x128xf32>
    %25 = arith.mulf %1, %5 : vector<8x128xf32>
    %26 = arith.mulf %3, %5 : vector<8x128xf32>
    %27 = arith.mulf %3, %7 : vector<8x128xf32>
    %28 = arith.mulf %5, %7 : vector<8x128xf32>
    %29 = arith.mulf %5, %9 : vector<8x128xf32>
    %30 = arith.mulf %7, %9 : vector<8x128xf32>
    %cst_10 = arith.constant 0.850237608 : f32
    %31 = vector.broadcast %cst_10 : f32 to vector<8x128xf32>
    %32 = arith.mulf %31, %10 : vector<8x128xf32>
    %cst_11 = arith.constant -0.0715757534 : f32
    %33 = vector.broadcast %cst_11 : f32 to vector<8x128xf32>
    %34 = arith.mulf %33, %25 : vector<8x128xf32>
    %cst_12 = arith.constant 0.460093617 : f32
    %35 = vector.broadcast %cst_12 : f32 to vector<8x128xf32>
    %36 = arith.mulf %35, %11 : vector<8x128xf32>
    %cst_13 = arith.constant -0.0876620337 : f32
    %37 = vector.broadcast %cst_13 : f32 to vector<8x128xf32>
    %38 = arith.mulf %37, %27 : vector<8x128xf32>
    %cst_14 = arith.constant 0.2016415 : f32
    %39 = vector.broadcast %cst_14 : f32 to vector<8x128xf32>
    %40 = arith.mulf %39, %12 : vector<8x128xf32>
    %41 = arith.addf %32, %40 : vector<8x128xf32>
    %cst_15 = arith.constant -0.0715757534 : f32
    %42 = vector.broadcast %cst_15 : f32 to vector<8x128xf32>
    %43 = arith.mulf %42, %29 : vector<8x128xf32>
    %44 = arith.addf %34, %43 : vector<8x128xf32>
    %cst_16 = arith.constant 7.488120e-02 : f32
    %45 = vector.broadcast %cst_16 : f32 to vector<8x128xf32>
    %46 = arith.mulf %45, %13 : vector<8x128xf32>
    %47 = arith.addf %36, %46 : vector<8x128xf32>
    %cst_17 = arith.constant 0.0798127427 : f32
    %48 = vector.broadcast %cst_17 : f32 to vector<8x128xf32>
    %49 = arith.mulf %48, %14 : vector<8x128xf32>
    %50 = arith.addf %38, %49 : vector<8x128xf32>
    %51 = arith.addf %41, %44 : vector<8x128xf32>
    %52 = arith.addf %47, %50 : vector<8x128xf32>
    %53 = arith.addf %51, %52 : vector<8x128xf32>
    %54 = arith.mulf %10, %10 : vector<8x128xf32>
    %cst_18 = arith.constant 1.000000e+00 : f32
    %55 = vector.broadcast %cst_18 : f32 to vector<8x128xf32>
    %56 = arith.mulf %55, %54 : vector<8x128xf32>
    %57 = arith.mulf %10, %11 : vector<8x128xf32>
    %cst_19 = arith.constant 1.000000e+00 : f32
    %58 = vector.broadcast %cst_19 : f32 to vector<8x128xf32>
    %59 = arith.mulf %58, %57 : vector<8x128xf32>
    %60 = arith.mulf %10, %12 : vector<8x128xf32>
    %cst_20 = arith.constant 0.333333343 : f32
    %61 = vector.broadcast %cst_20 : f32 to vector<8x128xf32>
    %62 = arith.mulf %61, %60 : vector<8x128xf32>
    %63 = arith.mulf %24, %24 : vector<8x128xf32>
    %cst_21 = arith.constant 1.000000e+00 : f32
    %64 = vector.broadcast %cst_21 : f32 to vector<8x128xf32>
    %65 = arith.mulf %64, %63 : vector<8x128xf32>
    %66 = arith.mulf %24, %26 : vector<8x128xf32>
    %cst_22 = arith.constant 1.63299322 : f32
    %67 = vector.broadcast %cst_22 : f32 to vector<8x128xf32>
    %68 = arith.mulf %67, %66 : vector<8x128xf32>
    %69 = arith.addf %56, %68 : vector<8x128xf32>
    %70 = arith.mulf %24, %28 : vector<8x128xf32>
    %cst_23 = arith.constant 0.816496611 : f32
    %71 = vector.broadcast %cst_23 : f32 to vector<8x128xf32>
    %72 = arith.mulf %71, %70 : vector<8x128xf32>
    %73 = arith.addf %59, %72 : vector<8x128xf32>
    %74 = arith.mulf %25, %25 : vector<8x128xf32>
    %cst_24 = arith.constant 0.333333343 : f32
    %75 = vector.broadcast %cst_24 : f32 to vector<8x128xf32>
    %76 = arith.mulf %75, %74 : vector<8x128xf32>
    %77 = arith.addf %62, %76 : vector<8x128xf32>
    %78 = arith.mulf %25, %27 : vector<8x128xf32>
    %cst_25 = arith.constant 0.816496611 : f32
    %79 = vector.broadcast %cst_25 : f32 to vector<8x128xf32>
    %80 = arith.mulf %79, %78 : vector<8x128xf32>
    %81 = arith.addf %65, %80 : vector<8x128xf32>
    %82 = arith.mulf %25, %29 : vector<8x128xf32>
    %cst_26 = arith.constant 0.666666686 : f32
    %83 = vector.broadcast %cst_26 : f32 to vector<8x128xf32>
    %84 = arith.mulf %83, %82 : vector<8x128xf32>
    %85 = arith.addf %69, %84 : vector<8x128xf32>
    %86 = arith.mulf %11, %11 : vector<8x128xf32>
    %cst_27 = arith.constant 5.000000e-01 : f32
    %87 = vector.broadcast %cst_27 : f32 to vector<8x128xf32>
    %88 = arith.mulf %87, %86 : vector<8x128xf32>
    %89 = arith.addf %73, %88 : vector<8x128xf32>
    %90 = arith.mulf %11, %12 : vector<8x128xf32>
    %cst_28 = arith.constant 0.833333313 : f32
    %91 = vector.broadcast %cst_28 : f32 to vector<8x128xf32>
    %92 = arith.mulf %91, %90 : vector<8x128xf32>
    %93 = arith.addf %77, %92 : vector<8x128xf32>
    %94 = arith.mulf %11, %13 : vector<8x128xf32>
    %cst_29 = arith.constant 5.000000e-01 : f32
    %95 = vector.broadcast %cst_29 : f32 to vector<8x128xf32>
    %96 = arith.mulf %95, %94 : vector<8x128xf32>
    %97 = arith.addf %81, %96 : vector<8x128xf32>
    %98 = arith.mulf %26, %26 : vector<8x128xf32>
    %cst_30 = arith.constant 0.833333313 : f32
    %99 = vector.broadcast %cst_30 : f32 to vector<8x128xf32>
    %100 = arith.mulf %99, %98 : vector<8x128xf32>
    %101 = arith.addf %85, %100 : vector<8x128xf32>
    %102 = arith.mulf %26, %28 : vector<8x128xf32>
    %cst_31 = arith.constant 1.33333337 : f32
    %103 = vector.broadcast %cst_31 : f32 to vector<8x128xf32>
    %104 = arith.mulf %103, %102 : vector<8x128xf32>
    %105 = arith.addf %89, %104 : vector<8x128xf32>
    %106 = arith.mulf %26, %30 : vector<8x128xf32>
    %cst_32 = arith.constant 0.816496611 : f32
    %107 = vector.broadcast %cst_32 : f32 to vector<8x128xf32>
    %108 = arith.mulf %107, %106 : vector<8x128xf32>
    %109 = arith.addf %93, %108 : vector<8x128xf32>
    %110 = arith.mulf %27, %27 : vector<8x128xf32>
    %cst_33 = arith.constant 5.000000e-01 : f32
    %111 = vector.broadcast %cst_33 : f32 to vector<8x128xf32>
    %112 = arith.mulf %111, %110 : vector<8x128xf32>
    %113 = arith.addf %97, %112 : vector<8x128xf32>
    %114 = arith.mulf %27, %29 : vector<8x128xf32>
    %cst_34 = arith.constant 0.816496611 : f32
    %115 = vector.broadcast %cst_34 : f32 to vector<8x128xf32>
    %116 = arith.mulf %115, %114 : vector<8x128xf32>
    %117 = arith.addf %101, %116 : vector<8x128xf32>
    %118 = arith.mulf %12, %12 : vector<8x128xf32>
    %cst_35 = arith.constant 5.000000e-01 : f32
    %119 = vector.broadcast %cst_35 : f32 to vector<8x128xf32>
    %120 = arith.mulf %119, %118 : vector<8x128xf32>
    %121 = arith.addf %105, %120 : vector<8x128xf32>
    %122 = arith.mulf %12, %13 : vector<8x128xf32>
    %cst_36 = arith.constant 0.833333313 : f32
    %123 = vector.broadcast %cst_36 : f32 to vector<8x128xf32>
    %124 = arith.mulf %123, %122 : vector<8x128xf32>
    %125 = arith.addf %109, %124 : vector<8x128xf32>
    %126 = arith.mulf %12, %14 : vector<8x128xf32>
    %cst_37 = arith.constant 0.333333343 : f32
    %127 = vector.broadcast %cst_37 : f32 to vector<8x128xf32>
    %128 = arith.mulf %127, %126 : vector<8x128xf32>
    %129 = arith.addf %113, %128 : vector<8x128xf32>
    %130 = arith.mulf %28, %28 : vector<8x128xf32>
    %cst_38 = arith.constant 0.833333313 : f32
    %131 = vector.broadcast %cst_38 : f32 to vector<8x128xf32>
    %132 = arith.mulf %131, %130 : vector<8x128xf32>
    %133 = arith.addf %117, %132 : vector<8x128xf32>
    %134 = arith.mulf %28, %30 : vector<8x128xf32>
    %cst_39 = arith.constant 1.63299322 : f32
    %135 = vector.broadcast %cst_39 : f32 to vector<8x128xf32>
    %136 = arith.mulf %135, %134 : vector<8x128xf32>
    %137 = arith.addf %121, %136 : vector<8x128xf32>
    %138 = arith.mulf %29, %29 : vector<8x128xf32>
    %cst_40 = arith.constant 0.333333343 : f32
    %139 = vector.broadcast %cst_40 : f32 to vector<8x128xf32>
    %140 = arith.mulf %139, %138 : vector<8x128xf32>
    %141 = arith.addf %125, %140 : vector<8x128xf32>
    %142 = arith.mulf %13, %13 : vector<8x128xf32>
    %cst_41 = arith.constant 5.000000e-01 : f32
    %143 = vector.broadcast %cst_41 : f32 to vector<8x128xf32>
    %144 = arith.mulf %143, %142 : vector<8x128xf32>
    %145 = arith.addf %129, %144 : vector<8x128xf32>
    %146 = arith.mulf %13, %14 : vector<8x128xf32>
    %cst_42 = arith.constant 1.000000e+00 : f32
    %147 = vector.broadcast %cst_42 : f32 to vector<8x128xf32>
    %148 = arith.mulf %147, %146 : vector<8x128xf32>
    %149 = arith.addf %133, %148 : vector<8x128xf32>
    %150 = arith.mulf %30, %30 : vector<8x128xf32>
    %cst_43 = arith.constant 1.000000e+00 : f32
    %151 = vector.broadcast %cst_43 : f32 to vector<8x128xf32>
    %152 = arith.mulf %151, %150 : vector<8x128xf32>
    %153 = arith.addf %137, %152 : vector<8x128xf32>
    %154 = arith.mulf %14, %14 : vector<8x128xf32>
    %cst_44 = arith.constant 1.000000e+00 : f32
    %155 = vector.broadcast %cst_44 : f32 to vector<8x128xf32>
    %156 = arith.mulf %155, %154 : vector<8x128xf32>
    %157 = arith.addf %141, %156 : vector<8x128xf32>
    %158 = arith.addf %149, %153 : vector<8x128xf32>
    %159 = arith.addf %157, %145 : vector<8x128xf32>
    %160 = arith.addf %158, %159 : vector<8x128xf32>
    %cst_45 = arith.constant -0.912551462 : f32
    %161 = vector.broadcast %cst_45 : f32 to vector<8x128xf32>
    %162 = arith.mulf %161, %1 : vector<8x128xf32>
    %cst_46 = arith.constant 0.323920518 : f32
    %163 = vector.broadcast %cst_46 : f32 to vector<8x128xf32>
    %164 = arith.mulf %163, %5 : vector<8x128xf32>
    %165 = arith.addf %162, %164 : vector<8x128xf32>
    %cst_47 = arith.constant 0.249650404 : f32
    %166 = vector.broadcast %cst_47 : f32 to vector<8x128xf32>
    %167 = arith.mulf %166, %9 : vector<8x128xf32>
    %168 = arith.addf %165, %167 : vector<8x128xf32>
    %169 = arith.mulf %168, %168 : vector<8x128xf32>
    %cst_48 = arith.constant 2.000000e+00 : f32
    %170 = vector.broadcast %cst_48 : f32 to vector<8x128xf32>
    %171 = arith.mulf %170, %53 : vector<8x128xf32>
    %172 = arith.subf %169, %171 : vector<8x128xf32>
    %173 = arith.mulf %23, %172 : vector<8x128xf32>
    %cst_49 = arith.constant 0.749536276 : f32
    %174 = vector.broadcast %cst_49 : f32 to vector<8x128xf32>
    %175 = arith.addf %174, %173 : vector<8x128xf32>
    %176 = arith.mulf %23, %23 : vector<8x128xf32>
    %177 = arith.mulf %176, %160 : vector<8x128xf32>
    %178 = arith.addf %175, %177 : vector<8x128xf32>
    %c0_50 = arith.constant 0 : index
    %c0_51 = arith.constant 0 : index
    %179 = vector.load %arg2[%c0_50, %c0_51] : memref<8x128xf32, #tpu.memory_space<vmem>>, vector<8x128xf32>
    tpu.vector_store %arg2[%c0_50, %c0_51], %178 {strides = array<i32>} : memref<8x128xf32, #tpu.memory_space<vmem>>, vector<8x128xf32>,
    return
  }
  func.func @transform_0(%arg0: i32) -> (i32, i32, i32) {
    %c0_i32 = arith.constant 0 : i32
    %c0_i32_0 = arith.constant 0 : i32
    %c0_i32_1 = arith.constant 0 : i32
    return %c0_i32, %arg0, %c0_i32_0 : i32, i32, i32
  }
  func.func @transform_1(%arg0: i32) -> (i32, i32) {
    %c0_i32 = arith.constant 0 : i32
    %c0_i32_0 = arith.constant 0 : i32
    return %arg0, %c0_i32 : i32, i32
  }
}

</mosaic_0001>

<bundles_post_ra>
// kernel: loss_batch.1
= control target key start
LH: loop header
LB: loop body
LE: loop exit
PB: predicated region body
PF: predicated region fallthrough
CT: control target
= control target key end

     0   :  { %6 = vsyncpa [#allocation4], 0  ;;  %s688_s0 = inlined_call_operand.vmem [shape: f32[5,16,128], index: 0, kind: input, shape index: {}]   ;;  %s689_s1 = inlined_call_operand.hbm [shape: f32[16,128], index: 1, kind: output, shape index: {}]  }
   0x1   :  { %8 = vsyncpa [#allocation4 + $0x1], 0  ;;  %s508_s6 = smov 0   ;;  %s510_s7 = smov 0  }
   0x2   :  { %s512_s8 = smov 0   ;;  %s514_s9 = smov 0  }
   0x3 LB: > { %s375_s10 = sadd.s32 4294967295, %s495_s9   ;;  %s376_s11 = sadd.s32 4294967294, %s495_s9   ;;  %s495_s9 = sphi %s514_s9, %s695_s9   ;;  %s491_s8 = sphi %s512_s8, %s694_s8   ;;  %s487_s7 = sphi %s510_s7, %s693_s7   ;;  %s483_s6 = sphi %s508_s6, %s692_s6  }
   0x4   : > { %s531_s12 = sadd.s32 1, %s495_s9   ;;  %s21_s13 = sadd.s32 1, %s491_s8 }
   0x5   : > { %s18_s14 = ssub.s32 %s495_s9, %s531_s12  ;;  %p28_p0 = scmp.ne.s32.totalorder %s491_s8, %s487_s7 }
   0x6   : > { %p19_p1 = scmp.eq.s32.totalorder %s18_s14, 0  ;;  %p29_p2 = scmp.eq.s32.totalorder %s495_s9, 0 }
   0x7   : > { %p58_p3 = scmp.eq.s32.totalorder %s375_s10, 1  ;;  %p63_p4 = scmp.ne.s32.totalorder %s487_s7, %s483_s6 }
   0x8   : > { %s544_s15 = scalar_select %p19_p1, %s491_s8, %s21_s13  }
   0x9   : > { %p30_p5 = por %p29_p2, %p28_p0  ;;  %p546_p6 = por %p58_p3, %p28_p0 }
   0xa   : > { %p64_p7 = scmp.eq.s32.totalorder %s376_s11, 1  ;;  %p378_p9 = scmp.ge.s32.totalorder %s495_s9, 2 }
   0xc   : > { %p550_p8 = por %p64_p7, %p63_p4  ;;  %80 = sbr.rel (%p378_p9) target bundleno = 26 (0x1a), region = 16 }
  0x13   : > { %83 = sbr.rel (!%p30_p5) target bundleno = 26 (0x1a), region = 20  ;;  %s85_s18 = sand.u32 (%p30_p5), 1, %s491_s8  }
  0x14   : > { %s379_s19 = sshll.u32 (%p30_p5), %s495_s9, 3  ;;  %s390_s20 = smul.u32 (%p30_p5), 40, %s85_s18 }
  0x15   : > { %s89_s23 = scalar_lea.vmem (%p30_p5), %s688_s0, %s379_s19 }
  0x16   : > { %v125_v0 = vld [vmem:[%s89_s23] sm:$0xff] (%p30_p5)  ;;  %v127_v1 = vld [vmem:[%s89_s23 + $0x10] sm:$0xff] (%p30_p5)  ;;  %s87_s24 = scalar_lea.vmem (%p30_p5), [#allocation2], %s390_s20 }
  0x17   : > { %v129_v2 = vld [vmem:[%s89_s23 + $0x20] sm:$0xff] (%p30_p5)  ;;  %v131_v3 = vld [vmem:[%s89_s23 + $0x30] sm:$0xff] (%p30_p5)  ;;  %126 = vst [vmem:[%s87_s24] sm:$0xff] (%p30_p5), %v125_v0  ;;  %128 = vst [vmem:[%s87_s24 + $0x8] sm:$0xff] (%p30_p5), %v127_v1 }
  0x18   : > { %v133_v4 = vld [vmem:[%s89_s23 + $0x40] sm:$0xff] (%p30_p5)  ;;  %130 = vst [vmem:[%s87_s24 + $0x10] sm:$0xff] (%p30_p5), %v129_v2  ;;  %132 = vst [vmem:[%s87_s24 + $0x18] sm:$0xff] (%p30_p5), %v131_v3 }
  0x19   : > { %134 = vst [vmem:[%s87_s24 + $0x20] sm:$0xff] (%p30_p5), %v133_v4 }
  0x1a PF: > { %p380_p10 = scmp.ge.s32.totalorder %s495_s9, 1  ;;  %p139_p11 = scmp.lt.s32.totalorder %s495_s9, 3 }
  0x1c   : > { %p140_p12 = pnand %p380_p10, %p139_p11 }
  0x1d   : > { %s565_s25 = sand.u32 (!%p140_p12), 1, %s487_s7   ;;  %s387_s29 = sshll.u32 (!%p140_p12), %s375_s10, 7 }
  0x1e   : > { %143 = sbr.rel (%p140_p12) target bundleno = 90 (0x5a), region = 58  ;;  %s381_s28 = sshll.u32 (!%p140_p12), %s565_s25, 3 }
  0x1f   : > { %s391_s26 = smul.u32 (!%p140_p12), 40, %s565_s25  ;;  %s164_s30 = scalar_lea.vmem (!%p140_p12), [#allocation3], %s381_s28 }
  0x20   : > { %s311_s2 = sshll.u32 (!%p140_p12), %s164_s30, 4  ;;  %s644_s5 = scalar_lea.hbm (!%p140_p12), %s689_s1, %s387_s29  ;;  %s646_s2 = int_to_ptr.vmem [resolvable:$true] %s311_s2 }
  0x21   : > { %s148_s27 = scalar_lea.vmem (!%p140_p12), [#allocation2], %s391_s26  ;;  %s298_s11 = scalar_lea.sflag (!%p140_p12), [#allocation4], %s565_s25 }
  0x22   : > { %v568_v5 = vld [vmem:[%s148_s27] sm:$0xff] (!%p140_p12)  ;;  %v382_v6 = vld [vmem:[%s148_s27 + $0x8] sm:$0xff] (!%p140_p12)  ;;  %v570_v7 = vld [vmem:[%s148_s27 + $0x10] sm:$0xff] (!%p140_p12)  ;;  %s433_s13 = scalar_lea.vmem (!%p140_p12), %s646_s2, 128  ;;  %s497_s10 = smov (!%p140_p12), [#allocation3]  }
  0x23   : > { %v384_v8 = vld [vmem:[%s148_s27 + $0x18] sm:$0xff] (!%p140_p12)  ;;  %v572_v9 = vld [vmem:[%s148_s27 + $0x20] sm:$0xff] (!%p140_p12)  ;;  %v174_v10 = vmul.f32 (!%p140_p12), %v568_v5, %v568_v5  ;;  %v175_v11 = vmul.f32 (!%p140_p12), %v382_v6, %v382_v6  ;;  %v578_v12 = vmul.f32 (!%p140_p12), %v570_v7, %v570_v7  ;;  %v187_v15 = vmul.f32 (!%p140_p12), %v382_v6, %v568_v5  ;;  %p434_p13 = scmp.ne.s32.totalorder (!%p140_p12), %s646_s2, %s433_s13  ;;  %s437_s14 = sshll.u32 (!%p140_p12), %s497_s10, 4  ;;  %s438_s14 = int_to_ptr.vmem [resolvable:$false] %s437_s14 }
  0x24   : > { %v580_v13 = vmul.f32 (!%p140_p12), %v384_v8, %v384_v8  ;;  %v584_v14 = vmul.f32 (!%p140_p12), %v572_v9, %v572_v9  ;;  %v188_v16 = vmul.f32 (!%p140_p12), %v570_v7, %v568_v5  ;;  %v189_v18 = vmul.f32 (!%p140_p12), %v570_v7, %v382_v6  ;;  %s439_s18 = scalar_lea.vmem (!%p140_p12), %s438_s14, 256  ;;  %p440_p2 = scmp.lt.s32.totalorder (!%p140_p12), %s646_s2, %s438_s14 }
  0x25   : > { %v179_v17 = vadd.f32 %v175_v11, %v174_v10  ;;  %v190_v19 = vmul.f32 %v384_v8, %v382_v6  ;;  %v591_v20 = vmul.f32 %v384_v8, %v570_v7  ;;  %v597_v22 = vmul.f32 %v572_v9, %v570_v7  ;;  %p435_p0 = pnand %p434_p13, %p546_p6  ;;  %p441_p3 = scmp.lt.s32.totalorder %s439_s18, %s433_s13 }
  0x26   : > { %v180_v21 = vadd.f32 %v580_v13, %v578_v12  ;;  %v194_v23 = vmul.f32 0.8502376, %v174_v10  ;;  %v195_v24 = vmul.f32 -0.07157575, %v188_v16  ;;  %v600_v25 = vmul.f32 %v572_v9, %v384_v8 }
  0x27   : > { %v196_v26 = vmul.f32 0.46009362, %v175_v11  ;;  %v197_v27 = vmul.f32 -0.087662034, %v190_v19  ;;  %v198_v28 = vmul.f32 0.2016415, %v578_v12  ;;  %v209_v34 = vmul.f32 %v174_v10, %v174_v10  ;;  %p436_p1 = pneg %p435_p0  ;;  %p442_p4 = por %p441_p3, %p440_p2 }
  0x28   : > { %v181_v29 = vadd.f32 %v180_v21, %v179_v17  ;;  %v200_v30 = vmul.f32 -0.07157575, %v597_v22  ;;  %v202_v31 = vmul.f32 0.0748812, %v580_v13  ;;  %v204_v32 = vmul.f32 0.07981274, %v584_v14 }
  0x29   : > { %v199_v33 = vadd.f32 %v198_v28, %v194_v23  ;;  %v210_v35 = vmul.f32 %v175_v11, %v174_v10  ;;  %v211_v36 = vmul.f32 %v578_v12, %v174_v10  ;;  %v214_v42 = vmul.f32 %v189_v18, %v187_v15  ;;  %p443_p5 = pnand %p442_p4, %p436_p1 }
  0x2a   : > { %v182_v37 = vadd.f32 %v181_v29, %v584_v14  ;;  %v201_v38 = vadd.f32 %v200_v30, %v195_v24  ;;  %v203_v39 = vadd.f32 %v202_v31, %v196_v26  ;;  %v205_v40 = vadd.f32 %v204_v32, %v197_v27 }
  0x2b   : > { %v212_v41 = vmul.f32 0.33333334, %v211_v36  ;;  %v217_v43 = vmul.f32 %v591_v20, %v187_v15  ;;  %v220_v44 = vmul.f32 %v188_v16, %v188_v16  ;;  %v213_v46 = vmul.f32 %v187_v15, %v187_v15 }
  0x2c   : > { %431 = vrcp.f32 %v182_v37  ;;  %v206_v45 = vadd.f32 %v201_v38, %v199_v33  ;;  %v223_v47 = vmul.f32 %v190_v19, %v188_v16  ;;  %v215_v48 = vmul.f32 1.6329932, %v214_v42 }
  0x2d   : > { %v218_v49 = vmul.f32 0.8164966, %v217_v43  ;;  %v221_v50 = vmul.f32 0.33333334, %v220_v44  ;;  %v226_v51 = vmul.f32 %v597_v22, %v188_v16  ;;  %v207_v52 = vadd.f32 %v205_v40, %v203_v39 }
  0x2e   : > { %v224_v53 = vmul.f32 0.8164966, %v223_v47  ;;  %v229_v54 = vmul.f32 %v175_v11, %v175_v11  ;;  %v232_v55 = vmul.f32 %v578_v12, %v175_v11  ;;  %v216_v56 = vadd.f32 %v215_v48, %v209_v34 }
  0x2f   : > { %v219_v57 = vadd.f32 %v218_v49, %v210_v35  ;;  %v222_v58 = vadd.f32 %v221_v50, %v212_v41  ;;  %v227_v59 = vmul.f32 0.6666667, %v226_v51  ;;  %v235_v63 = vmul.f32 %v580_v13, %v175_v11 }
  0x30   : > { %v225_v60 = vadd.f32 %v224_v53, %v213_v46  ;;  %v230_v61 = vmul.f32 0.5, %v229_v54  ;;  %v233_v62 = vmul.f32 0.8333333, %v232_v55  ;;  %v238_v1 = vmul.f32 %v189_v18, %v189_v18 }
  0x31   : > { %v228_v0 = vadd.f32 %v227_v59, %v216_v56  ;;  %v241_v2 = vmul.f32 %v591_v20, %v189_v18  ;;  %v244_v3 = vmul.f32 %v600_v25, %v189_v18  ;;  %v236_v8 = vmul.f32 0.5, %v235_v63 }
  0x32   : > { %v231_v4 = vadd.f32 %v230_v61, %v219_v57  ;;  %v234_v6 = vadd.f32 %v233_v62, %v222_v58  ;;  %v247_v10 = vmul.f32 %v190_v19, %v190_v19  ;;  %v239_v15 = vmul.f32 0.8333333, %v238_v1 }
  0x33   : > { %v242_v16 = vmul.f32 1.3333334, %v241_v2  ;;  %v245_v17 = vmul.f32 0.8164966, %v244_v3  ;;  %v250_v21 = vmul.f32 %v597_v22, %v190_v19  ;;  %v237_v23 = vadd.f32 %v236_v8, %v225_v60 }
  0x34   : > { %v248_v24 = vmul.f32 0.5, %v247_v10  ;;  %v253_v11 = vmul.f32 %v578_v12, %v578_v12  ;;  %v256_v26 = vmul.f32 %v580_v13, %v578_v12  ;;  %v240_v27 = vadd.f32 %v239_v15, %v228_v0 }
  0x35   : > { %v243_v28 = vadd.f32 %v242_v16, %v231_v4  ;;  %v246_v18 = vadd.f32 %v245_v17, %v234_v6  ;;  %v251_v29 = vmul.f32 0.8164966, %v250_v21  ;;  %v259_v34 = vmul.f32 %v584_v14, %v578_v12 }
  0x36   : > { %v432_v30 = vpop.eup %431  ;;  %v249_v31 = vadd.f32 %v248_v24, %v237_v23  ;;  %v254_v32 = vmul.f32 0.5, %v253_v11  ;;  %v257_v33 = vmul.f32 0.8333333, %v256_v26  ;;  %v262_v36 = vmul.f32 %v591_v20, %v591_v20 }
  0x37   : > { %v184_v19 = vmul.f32 %v432_v30, %v182_v37  ;;  %v252_v35 = vadd.f32 %v251_v29, %v240_v27  ;;  %v265_v38 = vmul.f32 %v600_v25, %v591_v20  ;;  %v260_v41 = vmul.f32 0.33333334, %v259_v34 }
  0x38   : > { %v255_v39 = vadd.f32 %v254_v32, %v243_v28  ;;  %v258_v40 = vadd.f32 %v257_v33, %v246_v18  ;;  %v268_v42 = vmul.f32 %v597_v22, %v597_v22  ;;  %v263_v44 = vmul.f32 0.8333333, %v262_v36 }
  0x39   : > { %v185_v43 = vsub.f32 2.0, %v184_v19  ;;  %v266_v46 = vmul.f32 1.6329932, %v265_v38  ;;  %v271_v12 = vmul.f32 %v580_v13, %v580_v13  ;;  %v261_v37 = vadd.f32 %v260_v41, %v249_v31 }
  0x3a   : > { %v269_v47 = vmul.f32 0.33333334, %v268_v42  ;;  %v274_v48 = vmul.f32 %v584_v14, %v580_v13  ;;  %v276_v20 = vmul.f32 %v600_v25, %v600_v25  ;;  %v208_v49 = vadd.f32 %v207_v52, %v206_v45 }
  0x3b   : > { %v264_v50 = vadd.f32 %v263_v44, %v252_v35  ;;  %v267_v51 = vadd.f32 %v266_v46, %v255_v39  ;;  %v272_v53 = vmul.f32 0.5, %v271_v12  ;;  %v278_v54 = vmul.f32 %v584_v14, %v584_v14 }
  0x3c   : > { %v270_v22 = vadd.f32 %v269_v47, %v258_v40  ;;  %v283_v55 = vmul.f32 -0.91255146, %v568_v5  ;;  %v284_v56 = vmul.f32 0.32392052, %v570_v7  ;;  %v286_v13 = vmul.f32 0.2496504, %v572_v9 }
  0x3d   : > { %v273_v57 = vadd.f32 %v272_v53, %v261_v37  ;;  %v275_v58 = vadd.f32 %v274_v48, %v264_v50  ;;  %v277_v59 = vadd.f32 %v276_v20, %v267_v51  ;;  %v186_v25 = vmul.f32 %v432_v30, %v185_v43 }
  0x3e   : > { %v279_v45 = vadd.f32 %v278_v54, %v270_v22  ;;  %v285_v52 = vadd.f32 %v284_v56, %v283_v55  ;;  %v289_v63 = vmul.f32 2.0, %v208_v49 }
  0x3f   : > { %v280_v60 = vadd.f32 %v277_v59, %v275_v58  ;;  %v293_v5 = vmul.f32 %v186_v25, %v186_v25 }
  0x40   : > { %v281_v61 = vadd.f32 %v279_v45, %v273_v57  ;;  %v287_v62 = vadd.f32 %v286_v13, %v285_v52 }
  0x42   : > { %v282_v14 = vadd.f32 %v281_v61, %v280_v60  ;;  %v288_v0 = vmul.f32 %v287_v62, %v287_v62 }
  0x44   : > { %v290_v7 = vsub.f32 %v288_v0, %v289_v63  ;;  %v294_v2 = vmul.f32 %v293_v5, %v282_v14 }
  0x46   : > { %v291_v1 = vmul.f32 %v290_v7, %v186_v25 }
  0x48   : > { %v292_v9 = vadd.f32 0.7495363, %v291_v1 }
  0x4a   : > { %v295_v3 = vadd.f32 %v294_v2, %v292_v9 }
  0x4c   : > { %296 = vst [vmem:[%s164_s30] sm:$0xff] %v295_v3 }
  0x4d   : > { %446 = shalt.err (!%p443_p5)
}
  0x4e   : > { %s447_s19 = scalar_lea.hbm %s644_s5, 128  ;;  %s451_s22 = scalar_lea.hbm %s689_s1, 256 }
  0x4f   : > { %p448_p7 = scmp.ne.s32.totalorder %s644_s5, %s447_s19  ;;  %p452_p12 = scmp.lt.u32.totalorder %s644_s5, %s689_s1 }
  0x50   : > { %p453_p13 = scmp.lt.u32.totalorder %s451_s22, %s447_s19  ;;  %p455_p1 = scmp.lt.u32.totalorder %s447_s19, %s644_s5 }
  0x51   : > { %p449_p10 = pnand %p448_p7, %p546_p6 }
  0x52   : > { %p454_p0 = por %p453_p13, %p452_p12 }
  0x53   : > { %p450_p11 = pneg %p449_p10 }
  0x54   : > { %p456_p2 = por %p455_p1, %p454_p0 }
  0x56   : > { %p457_p3 = pnand %p456_p2, %p450_p11 }
  0x58   : > { %460 = shalt.err (!%p457_p3)
}
  0x59   : > { %392 = dma.vmem_to_hbm [thread:$0]  (%p546_p6), %s646_s2, 128, %s644_s5, %s298_s11  }
  0x5a PF: > { %s323_s25 = sand.u32 1, %s483_s6   ;;  %p395_p4 = pnand %p378_p9, %p550_p8 }
  0x5b   : > { %s324_s26 = scalar_lea.sflag [#allocation4], %s323_s25 }
  0x5c   : > { %478 = dma.done.wait (!%p395_p4), %s324_s26, 128  }
  0x5d   : > { %480 = vsyncadd (!%p395_p4), %s324_s26, 4294967168  ;;  %p11_p5 = scmp.ge.s32.totalorder %s531_s12, 4   ;;  %s692_s6 = smov %s487_s7 }
  0x5e   : > { %s693_s7 = smov %s491_s8  ;;  %s694_s8 = smov %s544_s15 }
  0x5f   : > { %s695_s9 = smov %s531_s12  ;;  %13 = sbr.rel (!%p11_p5) target bundleno = 3 (0x3), region = 106 }
  0x66   :  { %329 = vsyncpa [#allocation4], 1 }
  0x67   :  { %331 = vsyncpa [#allocation4 + $0x1], 1 }

</bundles_post_ra>
